<compile_context>
chip_gen: v7x
topology: tpu7x:2x2x1
jax: 0.10.0
libtpu: 0.0.40
codegen_flags: <defaults>
</compile_context>

<pallas_src>
import functools

import jax
import jax.numpy as jnp
from jax.experimental import pallas as pl
from jax.experimental.pallas import tpu as pltpu


def _round_up(x, m):
    return (x + m - 1) // m * m


def _classifier_kernel(x_ref, gamma_ref, beta_ref, w_ref, b_ref, o_ref,
                       acc_ref, *, n_total, n_tile, needs_n_mask,
                       n_valid_last, eps):
    """Fused streamed mean-pool -> LayerNorm -> Linear.

    x_ref     : (B_tile, N_tile, E)   one token tile of the input
    gamma_ref : (1, E)                LayerNorm weight (VMEM-resident)
    beta_ref  : (1, E)                LayerNorm bias   (VMEM-resident)
    w_ref     : (E, C_pad)            Linear weight, transposed + lane-padded
    b_ref     : (1, C_pad)            Linear bias, lane-padded
    o_ref     : (B_tile, C_pad)
    acc_ref   : (B_tile, E) f32       token-sum accumulator (VMEM scratch)
    """
    n_idx = pl.program_id(1)
    n_last = pl.num_programs(1) - 1

    @pl.when(n_idx == 0)
    def _init():
        acc_ref[...] = jnp.zeros_like(acc_ref)

    x = x_ref[...].astype(jnp.float32)                    # (B_tile, N_tile, E)

    if needs_n_mask:
        # Hot path: full tiles accumulate with zero masking overhead.
        @pl.when(n_idx != n_last)
        def _stream():
            acc_ref[...] += jnp.sum(x, axis=1)

        # Only the last token tile is padded -> mask only there, with a cheap
        # 2-D iota broadcast instead of a full-tile int32 iota.
        @pl.when(n_idx == n_last)
        def _stream_masked():
            tok = jax.lax.broadcasted_iota(jnp.int32, (n_tile, 1), 0)
            mask = (tok < n_valid_last)[None]             # (1, N_tile, 1)
            acc_ref[...] += jnp.sum(jnp.where(mask, x, 0.0), axis=1)
    else:
        acc_ref[...] += jnp.sum(x, axis=1)

    @pl.when(n_idx == n_last)
    def _finalize():
        pooled = acc_ref[...] * (1.0 / n_total)           # (B_tile, E)

        # LayerNorm over E (biased variance; eps matches the module: 1e-9).
        mu = jnp.mean(pooled, axis=-1, keepdims=True)
        centered = pooled - mu
        var = jnp.mean(centered * centered, axis=-1, keepdims=True)
        normed = centered * jax.lax.rsqrt(var + eps)
        normed = normed * gamma_ref[...] + beta_ref[...]

        # Linear: y = normed @ W^T + b (W prepared as (E, C_pad)); MXU
        # accumulates in f32 even if the weight is stored bf16.
        out = jnp.dot(normed.astype(w_ref.dtype), w_ref[...],
                      preferred_element_type=jnp.float32) + b_ref[...]
        o_ref[...] = out.astype(o_ref.dtype)


def prepare_classifier_params(gamma, beta, w, b, *, weight_dtype=None):
    """One-time parameter prep (transpose / pad / cast), hoisted out of the
    per-call forward path so the weight transpose is not re-executed per step.

    gamma/beta: (E,); w: (C, E); b: (C,)
    """
    C, E = w.shape
    c_pad = _round_up(C, 128)                 # lane-dense output stores
    if weight_dtype is None:
        # Small heads stay f32; large heads go bf16 (halves weight DMA + VMEM;
        # the matmul still accumulates in f32 via preferred_element_type).
        weight_dtype = (jnp.float32 if E * c_pad * 4 <= (8 << 20)
                        else jnp.bfloat16)
    gamma2 = gamma.reshape(1, E).astype(jnp.float32)
    beta2 = beta.reshape(1, E).astype(jnp.float32)
    w_t = jnp.zeros((E, c_pad), weight_dtype).at[:, :C].set(
        w.T.astype(weight_dtype))
    b2 = jnp.zeros((1, c_pad), jnp.float32).at[:, :C].set(
        b.astype(jnp.float32))
    return {"gamma": gamma2, "beta": beta2, "w_t": w_t, "b": b2,
            "num_classes": C}


def classifier_forward_prepared(x, params, *, eps=1e-9,
                                b_tile=None, n_tile=None):
    """x: (B, N, E); params from prepare_classifier_params. Returns (B, C) f32."""
    B, N, E = x.shape
    gamma2, beta2, w_t, b2 = (params["gamma"], params["beta"],
                              params["w_t"], params["b"])
    C = params["num_classes"]
    c_pad = w_t.shape[1]
    assert w_t.shape[0] == E

    itemsize = jnp.dtype(x.dtype).itemsize
    # Sublane packing for the input dtype: f32 -> 8, bf16 -> 16, int8/fp8 -> 32.
    sub_pack = max(8, 32 // itemsize)
    x_tile_budget = 6 * 1024 * 1024            # bytes per x buffer

    # ---- tile selection ----------------------------------------------------
    if b_tile is None:
        if B <= 8:
            b_tile = B                         # full batch (block == array dim)
        else:
            # Guarantee >= 2 batch blocks so both v7x TCs get work; multiple
            # of 8 keeps the (b_tile, c_pad) output block layout-legal.
            b_tile = min(128, _round_up(pl.cdiv(B, 2), 8))
    b_tile = min(b_tile, B)

    if n_tile is None:
        if b_tile * N * E * itemsize <= x_tile_budget:
            n_tile = N
        else:
            n_tile = max(sub_pack,
                         (x_tile_budget // (b_tile * E * itemsize))
                         // sub_pack * sub_pack)
    n_tile = min(n_tile, N)

    b_blocks = pl.cdiv(B, b_tile)
    n_blocks = pl.cdiv(N, n_tile)
    grid = (b_blocks, n_blocks)
    needs_n_mask = (N % n_tile) != 0
    n_valid_last = N - (n_blocks - 1) * n_tile

    # Deepen the x pipeline when the token loop is long enough to benefit
    # (hides per-step issue gap against 3.2 TB/s HBM on v7x).
    x_depth = 3 if n_blocks >= 3 else 2
    x_spec_kwargs = {}
    if x_depth == 3:
        x_spec_kwargs["pipeline_mode"] = pl.Buffered(3)
    x_spec = pl.BlockSpec((b_tile, n_tile, E), lambda bi, ni: (bi, ni, 0),
                          **x_spec_kwargs)

    # Output stays f32 (matches the f32-parameter PyTorch head even for bf16
    # activations).
    out_dtype = jnp.promote_types(x.dtype, jnp.float32)

    # Explicit scoped-VMEM budget computed from the chosen tiles (x pipeline +
    # double-buffered resident params + output + accumulator), with headroom;
    # capped under v7x's 64 MiB physical VMEM.
    vmem_bytes = (x_depth * b_tile * n_tile * E * itemsize
                  + 2 * E * c_pad * jnp.dtype(w_t.dtype).itemsize
                  + 2 * (2 * E + c_pad) * 4
                  + 2 * b_tile * c_pad * jnp.dtype(out_dtype).itemsize
                  + b_tile * E * 4)
    vmem_limit = int(min(56 << 20,
                         max(16 << 20, int(1.4 * vmem_bytes) + (2 << 20))))

    kernel = functools.partial(
        _classifier_kernel, n_total=N, n_tile=n_tile,
        needs_n_mask=needs_n_mask, n_valid_last=n_valid_last, eps=eps)

    out_padded = pl.pallas_call(
        kernel,
        out_shape=jax.ShapeDtypeStruct((B, c_pad), out_dtype),
        grid=grid,
        in_specs=[
            x_spec,
            pl.BlockSpec((1, E), lambda bi, ni: (0, 0)),
            pl.BlockSpec((1, E), lambda bi, ni: (0, 0)),
            pl.BlockSpec((E, c_pad), lambda bi, ni: (0, 0)),
            pl.BlockSpec((1, c_pad), lambda bi, ni: (0, 0)),
        ],
        out_specs=pl.BlockSpec((b_tile, c_pad), lambda bi, ni: (bi, 0)),
        scratch_shapes=[pltpu.VMEM((b_tile, E), jnp.float32)],
        compiler_params=pltpu.CompilerParams(
            dimension_semantics=("parallel", "arbitrary"),
            vmem_limit_bytes=vmem_limit),
    )(x, gamma2, beta2, w_t, b2)

    return out_padded[:, :C]


def classifier_forward(x, gamma, beta, w, b, *, eps=1e-9,
                       b_tile=None, n_tile=None, weight_dtype=None):
    """Convenience wrapper: prep params then run (prefer preparing once)."""
    params = prepare_classifier_params(gamma, beta, w, b,
                                       weight_dtype=weight_dtype)
    return classifier_forward_prepared(x, params, eps=eps,
                                       b_tile=b_tile, n_tile=n_tile)


def reference_forward(x, gamma, beta, w, b, eps=1e-9):
    pooled = jnp.mean(x.astype(jnp.float32), axis=1)
    mu = jnp.mean(pooled, axis=-1, keepdims=True)
    var = jnp.mean((pooled - mu) ** 2, axis=-1, keepdims=True)
    normed = (pooled - mu) / jnp.sqrt(var + eps)
    normed = normed * gamma + beta
    return normed @ w.T + b


if __name__ == "__main__":
    key = jax.random.PRNGKey(0)
    kx, kg, kb, kw, kbias, kx2, kx3, kw3, kb3 = jax.random.split(key, 9)

    # ---- case 1: small shapes consistent with the module -------------------
    B, N, E, C = 2, 8, 32, 10
    x = jax.random.normal(kx, (B, N, E), dtype=jnp.float32)
    gamma = jnp.ones((E,), jnp.float32) + 0.01 * jax.random.normal(kg, (E,))
    beta = 0.01 * jax.random.normal(kb, (E,), dtype=jnp.float32)
    w = jax.random.normal(kw, (C, E), dtype=jnp.float32) * (1.0 / jnp.sqrt(E))
    b = 0.01 * jax.random.normal(kbias, (C,), dtype=jnp.float32)

    params = prepare_classifier_params(gamma, beta, w, b)   # prep once
    out = jax.block_until_ready(classifier_forward_prepared(x, params))
    ref = reference_forward(x, gamma, beta, w, b)
    assert out.shape == (B, C)
    assert jnp.allclose(out, ref, atol=1e-4, rtol=1e-4), (
        f"case1 max abs err: {jnp.max(jnp.abs(out - ref))}")

    # ---- case 2: token-tiled reduction with masked tail (N=20, n_tile=8) ---
    B2, N2 = 4, 20
    x2 = jax.random.normal(kx2, (B2, N2, E), dtype=jnp.float32)
    out2 = jax.block_until_ready(
        classifier_forward_prepared(x2, params, n_tile=8))
    ref2 = reference_forward(x2, gamma, beta, w, b)
    assert out2.shape == (B2, C)
    assert jnp.allclose(out2, ref2, atol=1e-4, rtol=1e-4), (
        f"case2 max abs err: {jnp.max(jnp.abs(out2 - ref2))}")

    # ---- case 3: exercises batch split (>=2 parallel blocks) + Buffered(3) -
    B3, N3, E3, C3 = 32, 80, 256, 1000
    x3 = jax.random.normal(kx3, (B3, N3, E3), dtype=jnp.float32)
    w3 = jax.random.normal(kw3, (C3, E3), dtype=jnp.float32) / jnp.sqrt(E3)
    b3 = 0.01 * jax.random.normal(kb3, (C3,), dtype=jnp.float32)
    g3 = jnp.ones((E3,), jnp.float32)
    be3 = jnp.zeros((E3,), jnp.float32)
    params3 = prepare_classifier_params(g3, be3, w3, b3)
    out3 = jax.block_until_ready(
        classifier_forward_prepared(x3, params3, n_tile=16))
    ref3 = reference_forward(x3, g3, be3, w3, b3)
    assert out3.shape == (B3, C3)
    assert jnp.allclose(out3, ref3, atol=2e-3, rtol=2e-3), (
        f"case3 max abs err: {jnp.max(jnp.abs(out3 - ref3))}")

    # ---- case 4: bf16-stored weight path (large-head mode, forced) ---------
    params_bf16 = prepare_classifier_params(gamma, beta, w, b,
                                            weight_dtype=jnp.bfloat16)
    out4 = jax.block_until_ready(classifier_forward_prepared(x, params_bf16))
    assert out4.shape == (B, C)
    assert jnp.allclose(out4, ref, atol=3e-2, rtol=3e-2), (
        f"case4 max abs err: {jnp.max(jnp.abs(out4 - ref))}")

    print("KERNEL_OK")
</pallas_src>

<mosaic_0001>
module attributes {stable_mosaic.version = 11 : i64} {
  func.func @_classifier_kernel(%arg0: i32, %arg1: i32, %arg2: memref<2x8x32xf32, #tpu.memory_space<vmem>>, %arg3: memref<1x32xf32, #tpu.memory_space<vmem>>, %arg4: memref<1x32xf32, #tpu.memory_space<vmem>>, %arg5: memref<32x128xf32, #tpu.memory_space<vmem>>, %arg6: memref<1x128xf32, #tpu.memory_space<vmem>>, %arg7: memref<2x128xf32, #tpu.memory_space<vmem>>, %arg8: memref<2x32xf32, #tpu.memory_space<vmem>>) attributes {dimension_semantics = [#tpu.dimension_semantics<parallel>, #tpu.dimension_semantics<arbitrary>], iteration_bounds = array<i64: 1, 1>, scalar_prefetch = 0 : i64, scratch_operands = 1 : i64, tpu.core_type = #tpu.core_type<tc>, window_params = [{transform_indices = @transform_0, window_bounds = array<i64: 2, 8, 32>}, {pipeline_mode = #tpu.pipeline_mode<synchronous>, transform_indices = @transform_1, window_bounds = array<i64: 1, 32>}, {pipeline_mode = #tpu.pipeline_mode<synchronous>, transform_indices = @transform_2, window_bounds = array<i64: 1, 32>}, {pipeline_mode = #tpu.pipeline_mode<synchronous>, transform_indices = @transform_3, window_bounds = array<i64: 32, 128>}, {pipeline_mode = #tpu.pipeline_mode<synchronous>, transform_indices = @transform_4, window_bounds = array<i64: 1, 128>}, {transform_indices = @transform_5, window_bounds = array<i64: 2, 128>}]} {
    %c0_i32 = arith.constant 0 : i32
    %0 = arith.cmpi eq, %arg1, %c0_i32 : i32
    %1 = arith.extui %0 : i1 to i32
    %c0_i32_0 = arith.constant 0 : i32
    %2 = arith.cmpi ne, %1, %c0_i32_0 : i32
    scf.if %2 {
      %cst_9 = arith.constant 0.000000e+00 : f32
      %11 = vector.broadcast %cst_9 : f32 to vector<2x32xf32>
      %c0_10 = arith.constant 0 : index
      %c0_11 = arith.constant 0 : index
      %12 = vector.load %arg8[%c0_10, %c0_11] : memref<2x32xf32, #tpu.memory_space<vmem>>, vector<2x32xf32>
      tpu.vector_store %arg8[%c0_10, %c0_11], %11 {strides = array<i32>} : memref<2x32xf32, #tpu.memory_space<vmem>>, vector<2x32xf32>,
    } else {
    }
    %c0 = arith.constant 0 : index
    %c0_1 = arith.constant 0 : index
    %c0_2 = arith.constant 0 : index
    %3 = vector.load %arg2[%c0, %c0_1, %c0_2] : memref<2x8x32xf32, #tpu.memory_space<vmem>>, vector<2x8x32xf32>
    %c0_3 = arith.constant 0 : index
    %c0_4 = arith.constant 0 : index
    %4 = vector.load %arg8[%c0_3, %c0_4] : memref<2x32xf32, #tpu.memory_space<vmem>>, vector<2x32xf32>
    %cst = arith.constant dense<0.000000e+00> : vector<2x32xf32>
    %5 = vector.multi_reduction <add>, %3, %cst [1] : vector<2x8x32xf32> to vector<2x32xf32>
    %6 = arith.addf %4, %5 : vector<2x32xf32>
    %c0_5 = arith.constant 0 : index
    %c0_6 = arith.constant 0 : index
    %7 = vector.load %arg8[%c0_5, %c0_6] : memref<2x32xf32, #tpu.memory_space<vmem>>, vector<2x32xf32>
    tpu.vector_store %arg8[%c0_5, %c0_6], %6 {strides = array<i32>} : memref<2x32xf32, #tpu.memory_space<vmem>>, vector<2x32xf32>,
    %c0_i32_7 = arith.constant 0 : i32
    %8 = arith.cmpi eq, %arg1, %c0_i32_7 : i32
    %9 = arith.extui %8 : i1 to i32
    %c0_i32_8 = arith.constant 0 : i32
    %10 = arith.cmpi ne, %9, %c0_i32_8 : i32
    scf.if %10 {
      %c0_9 = arith.constant 0 : index
      %c0_10 = arith.constant 0 : index
      %11 = vector.load %arg8[%c0_9, %c0_10] : memref<2x32xf32, #tpu.memory_space<vmem>>, vector<2x32xf32>
      %cst_11 = arith.constant 1.250000e-01 : f32
      %12 = vector.broadcast %cst_11 : f32 to vector<2x32xf32>
      %13 = arith.mulf %11, %12 : vector<2x32xf32>
      %cst_12 = arith.constant dense<0.000000e+00> : vector<2xf32>
      %14 = vector.multi_reduction <add>, %13, %cst_12 [1] : vector<2x32xf32> to vector<2xf32>
      %15 = vector.shape_cast %14 : vector<2xf32> to vector<2x1xf32>
      %cst_13 = arith.constant 3.200000e+01 : f32
      %16 = vector.broadcast %cst_13 : f32 to vector<2x1xf32>
      %17 = arith.divf %15, %16 : vector<2x1xf32>
      %18 = vector.broadcast %17 : vector<2x1xf32> to vector<2x32xf32>
      %19 = arith.subf %13, %18 : vector<2x32xf32>
      %20 = arith.mulf %19, %19 : vector<2x32xf32>
      %cst_14 = arith.constant dense<0.000000e+00> : vector<2xf32>
      %21 = vector.multi_reduction <add>, %20, %cst_14 [1] : vector<2x32xf32> to vector<2xf32>
      %22 = vector.shape_cast %21 : vector<2xf32> to vector<2x1xf32>
      %cst_15 = arith.constant 3.200000e+01 : f32
      %23 = vector.broadcast %cst_15 : f32 to vector<2x1xf32>
      %24 = arith.divf %22, %23 : vector<2x1xf32>
      %cst_16 = arith.constant 9.99999971E-10 : f32
      %25 = vector.broadcast %cst_16 : f32 to vector<2x1xf32>
      %26 = arith.addf %24, %25 : vector<2x1xf32>
      %27 = math.rsqrt %26 : vector<2x1xf32>
      %28 = vector.broadcast %27 : vector<2x1xf32> to vector<2x32xf32>
      %29 = arith.mulf %19, %28 : vector<2x32xf32>
      %c0_17 = arith.constant 0 : index
      %c0_18 = arith.constant 0 : index
      %30 = vector.load %arg3[%c0_17, %c0_18] : memref<1x32xf32, #tpu.memory_space<vmem>>, vector<1x32xf32>
      %31 = vector.broadcast %30 : vector<1x32xf32> to vector<2x32xf32>
      %32 = arith.mulf %29, %31 : vector<2x32xf32>
      %c0_19 = arith.constant 0 : index
      %c0_20 = arith.constant 0 : index
      %33 = vector.load %arg4[%c0_19, %c0_20] : memref<1x32xf32, #tpu.memory_space<vmem>>, vector<1x32xf32>
      %34 = vector.broadcast %33 : vector<1x32xf32> to vector<2x32xf32>
      %35 = arith.addf %32, %34 : vector<2x32xf32>
      %c0_21 = arith.constant 0 : index
      %c0_22 = arith.constant 0 : index
      %36 = vector.load %arg5[%c0_21, %c0_22] : memref<32x128xf32, #tpu.memory_space<vmem>>, vector<32x128xf32>
      %cst_23 = arith.constant dense<0.000000e+00> : vector<2x128xf32>
      %37 = tpu.matmul %35, %36, %cst_23 {dimension_numbers = #tpu.dot_dimension_numbers<[1], [0], [0], [1], [0, 0, 1, 1], [], []>} : vector<2x32xf32>, vector<32x128xf32>, vector<2x128xf32> -> vector<2x128xf32>
      %c0_24 = arith.constant 0 : index
      %c0_25 = arith.constant 0 : index
      %38 = vector.load %arg6[%c0_24, %c0_25] : memref<1x128xf32, #tpu.memory_space<vmem>>, vector<1x128xf32>
      %39 = vector.broadcast %38 : vector<1x128xf32> to vector<2x128xf32>
      %40 = arith.addf %37, %39 : vector<2x128xf32>
      %c0_26 = arith.constant 0 : index
      %c0_27 = arith.constant 0 : index
      %41 = vector.load %arg7[%c0_26, %c0_27] : memref<2x128xf32, #tpu.memory_space<vmem>>, vector<2x128xf32>
      tpu.vector_store %arg7[%c0_26, %c0_27], %40 {strides = array<i32>} : memref<2x128xf32, #tpu.memory_space<vmem>>, vector<2x128xf32>,
    } else {
    }
    return
  }
  func.func @transform_0(%arg0: i32, %arg1: i32) -> (i32, i32, i32) {
    %c0_i32 = arith.constant 0 : i32
    %c0_i32_0 = arith.constant 0 : i32
    return %arg0, %arg1, %c0_i32 : i32, i32, i32
  }
  func.func @transform_1(%arg0: i32, %arg1: i32) -> (i32, i32) {
    %c0_i32 = arith.constant 0 : i32
    %c0_i32_0 = arith.constant 0 : i32
    %c0_i32_1 = arith.constant 0 : i32
    return %c0_i32, %c0_i32_0 : i32, i32
  }
  func.func @transform_2(%arg0: i32, %arg1: i32) -> (i32, i32) {
    %c0_i32 = arith.constant 0 : i32
    %c0_i32_0 = arith.constant 0 : i32
    %c0_i32_1 = arith.constant 0 : i32
    return %c0_i32, %c0_i32_0 : i32, i32
  }
  func.func @transform_3(%arg0: i32, %arg1: i32) -> (i32, i32) {
    %c0_i32 = arith.constant 0 : i32
    %c0_i32_0 = arith.constant 0 : i32
    %c0_i32_1 = arith.constant 0 : i32
    return %c0_i32, %c0_i32_0 : i32, i32
  }
  func.func @transform_4(%arg0: i32, %arg1: i32) -> (i32, i32) {
    %c0_i32 = arith.constant 0 : i32
    %c0_i32_0 = arith.constant 0 : i32
    %c0_i32_1 = arith.constant 0 : i32
    return %c0_i32, %c0_i32_0 : i32, i32
  }
  func.func @transform_5(%arg0: i32, %arg1: i32) -> (i32, i32) {
    %c0_i32 = arith.constant 0 : i32
    %c0_i32_0 = arith.constant 0 : i32
    return %arg0, %c0_i32 : i32, i32
  }
}

</mosaic_0001>

<bundles_post_ra>
// kernel: tpu_custom_call.1
= control target key start
LH: loop header
LB: loop body
LE: loop exit
PB: predicated region body
PF: predicated region fallthrough
CT: control target
= control target key end

     0   :  { %10 = vsyncpa [#allocation4], 0  ;;  %s415_s0 = inlined_call_operand.hbm [shape: f32[2,8,32], index: 0, kind: input, shape index: {}]   ;;  %s416_s1 = inlined_call_operand.vmem [shape: f32[1,32], index: 1, kind: input, shape index: {}]   ;;  %s417_s2 = inlined_call_operand.vmem [shape: f32[1,32], index: 2, kind: input, shape index: {}]   ;;  %s418_s3 = inlined_call_operand.hbm [shape: f32[32,128], index: 3, kind: input, shape index: {}]   ;;  %s419_s4 = inlined_call_operand.vmem [shape: f32[1,128], index: 4, kind: input, shape index: {}]   ;;  %s420_s5 = inlined_call_operand.hbm [shape: f32[2,128], index: 5, kind: output, shape index: {}]  }
   0x1   :  { %11 = vsyncpa [#allocation7], 0 }
   0x2   :  { %12 = vsyncpa [#allocation5], 0  ;;  %s325_s18 = smov [#allocation3]   ;;  %s253_s22 = scalar_lea.hbm %s415_s0, 256 }
   0x3   :  { %s18_s19 = sshll.u32 %s325_s18, 4  ;;  %p254_p0 = scmp.ne.s32.totalorder %s415_s0, %s253_s22  ;;  %s19_s19 = int_to_ptr.vmem [resolvable:$true] %s18_s19 }
   0x4   :  { %p257_p1 = scmp.lt.u32.totalorder %s253_s22, %s415_s0 }
   0x6   :  { %p259_p2 = pnand %p257_p1, %p254_p0 }
   0x8   :  { %262 = shalt.err (!%p259_p2)
}
   0x9   :  { %s263_s27 = scalar_lea.vmem %s19_s19, 256  ;;  %p268_p4 = scmp.lt.s32.totalorder %s19_s19, %s19_s19 }
   0xa   :  { %p264_p3 = scmp.ne.s32.totalorder %s19_s19, %s263_s27  ;;  %p269_p5 = scmp.lt.s32.totalorder %s263_s27, %s263_s27 }
   0xc   :  { %p270_p6 = por %p269_p5, %p268_p4 }
   0xe   :  { %p271_p7 = pnand %p270_p6, %p264_p3 }
  0x10   :  { %274 = shalt.err (!%p271_p7)
}
  0x11   :  { %s326_s28 = smov 128   ;;  %s327_s29 = smov 8  }
  0x12   :  { %24 = dma.hbm_to_vmem [thread:$0]  %s415_s0, 256, %s19_s19, [#allocation4], %s326_s28, %s326_s28, %s327_s29  }
  0x13   :  { %s328_s7 = smov [#allocation6]   ;;  %s275_s11 = scalar_lea.hbm %s418_s3, 512 }
  0x14   :  { %s34_s8 = sshll.u32 %s328_s7, 4  ;;  %p276_p8 = scmp.ne.s32.totalorder %s418_s3, %s275_s11  ;;  %s35_s8 = int_to_ptr.vmem [resolvable:$true] %s34_s8 }
  0x15   :  { %p279_p9 = scmp.lt.u32.totalorder %s275_s11, %s418_s3 }
  0x17   :  { %p281_p10 = pnand %p279_p9, %p276_p8 }
  0x19   :  { %284 = shalt.err (!%p281_p10)
}
  0x1a   :  { %s285_s16 = scalar_lea.vmem %s35_s8, 512  ;;  %p290_p12 = scmp.lt.s32.totalorder %s35_s8, %s35_s8 }
  0x1b   :  { %p286_p11 = scmp.ne.s32.totalorder %s35_s8, %s285_s16  ;;  %p291_p13 = scmp.lt.s32.totalorder %s285_s16, %s285_s16 }
  0x1d   :  { %p292_p0 = por %p291_p13, %p290_p12 }
  0x1f   :  { %p293_p1 = pnand %p292_p0, %p286_p11 }
  0x21   :  { %296 = shalt.err (!%p293_p1)
}
  0x22   :  { %40 = dma.hbm_to_vmem [thread:$0]  %s418_s3, 512, %s35_s8, [#allocation7], %s326_s28, %s326_s28, %s327_s29  }
  0x23   :  { %319 = dma.done.wait [#allocation4], 256  }
  0x24   :  { %320 = vsyncadd [#allocation4], 4294967040 }
  0x25   :  { %321 = dma.done.wait [#allocation7], 512  }
  0x26   :  { %322 = vsyncadd [#allocation7], 4294966784  ;;  %vm53_vm0 = vcmask 254976   ;;  %v329_v0 = vmov 0.0   ;;  %vm58_vm1 = vcmask 261120   ;;  %v55_v1 = vld [vmem:[#allocation3] sm:$0xff] }
  0x27   :  { %54 = vst.msk [vmem:[#allocation2] sm:$0x3] %vm53_vm0, %v329_v0  ;;  %v56_v2 = vld [vmem:[#allocation3 + $0x8] sm:$0xff]  ;;  %v59_v3 = vsel %vm58_vm1, %v55_v1, 0.0  ;;  %vm75_vm2 = vcmask 1041409   ;;  %v116_v28 = vld [vmem:[#allocation6] sm:$0xff] }
  0x28   :  { %v66_v4 = vsel %vm58_vm1, %v56_v2, 0.0  ;;  %v60_v5 = vrot.slane %v59_v3, 4  ;;  %v117_v29 = vld [vmem:[#allocation6 + $0x8] sm:$0xff]  ;;  %v118_v30 = vld [vmem:[#allocation6 + $0x10] sm:$0xff]  ;;  %v330_v31 = vmov 0.0|0.0   ;;  %v119_v33 = vld [vmem:[#allocation6 + $0x18] sm:$0xff] }
  0x29   :  { %v67_v6 = vrot.slane %v66_v4, 4  ;;  %237 = vmatprep.subr.bf16.mxu0 %v330_v31  ;;  %v238_v32 = vpack.c.bf16 %v117_v29, %v116_v28  ;;  %vm331_vm3 = vmmov 0   ;;  %v241_v34 = vpack.c.bf16 %v119_v33, %v118_v30  ;;  %v217_v39 = vld [vmem:[%s416_s1] ss:$0 sm:$0xff]  ;;  %s332_s23 = smov [#allocation8]  }
  0x2a   :  { %v61_v7 = vadd.f32 %v60_v5, %v59_v3  ;;  %234 = vmatprep.mubr.msk.f32.mxu0 %vm331_vm3, %v329_v0  ;;  %v218_v41 = vld [vmem:[%s417_s2] ss:$0 sm:$0xff]  ;;  %s207_s24 = sshll.u32 %s332_s23, 4  ;;  %s208_s24 = int_to_ptr.vmem [resolvable:$true] %s207_s24 }
  0x2b   :  { %v68_v8 = vadd.f32 %v67_v6, %v66_v4  ;;  %239 = vmatpush3.bf16.msra.mxu0 %v238_v32  ;;  %v219_v44 = vld [vmem:[%s419_s4] ss:$0 sm:$0xff]  ;;  %s297_s1 = scalar_lea.vmem %s208_s24, 32  ;;  %p302_p3 = scmp.lt.s32.totalorder %s208_s24, %s208_s24 }
  0x2c   :  { %v62_v9 = vrot.slane %v61_v7, 2  ;;  %240 = vmatprep.subr.bf16.mxu0 %v330_v31  ;;  %p298_p2 = scmp.ne.s32.totalorder %s208_s24, %s297_s1  ;;  %p303_p4 = scmp.lt.s32.totalorder %s297_s1, %s297_s1 }
  0x2d   :  { %v69_v10 = vrot.slane %v68_v8, 2 }
  0x2e   :  { %v63_v11 = vadd.f32 %v62_v9, %v61_v7  ;;  %v57_v15 = vld [vmem:[#allocation2] sm:$0x3]  ;;  %p304_p5 = por %p303_p4, %p302_p3 }
  0x2f   :  { %v70_v12 = vadd.f32 %v69_v10, %v68_v8  ;;  %242 = vmatpush3.bf16.msra.mxu0 %v241_v34 }
  0x30   :  { %v64_v13 = vrot.slane %v63_v11, 1  ;;  %p305_p6 = pnand %p304_p5, %p298_p2 }
  0x31   :  { %v71_v14 = vrot.slane %v70_v12, 1 }
  0x32   :  { %v65_v16 = vadd.f32 %v64_v13, %v63_v11 }
  0x33   :  { %v72_v17 = vadd.f32 %v71_v14, %v70_v12 }
  0x35   :  { %v76_v18 = vsel %vm75_vm2, %v72_v17, %v65_v16 }
  0x36   :  { %v78_v19 = vadd.f32 %v76_v18, %v57_v15 }
  0x38   :  { %80 = vst.msk [vmem:[#allocation2] sm:$0x3] %vm53_vm0, %v78_v19 }
  0x3f   :  { %v84_v20 = vld [vmem:[#allocation2] sm:$0x3] }
  0x40   :  { %v85_v21 = vmul.f32 0.125, %v84_v20 }
  0x42   :  { %v86_v22 = vsel %vm53_vm0, %v85_v21, 0.0 }
  0x43   :  { %87 = vadd.xlane.f32.xlu0 %v86_v22 }
  0xd0   :  { %v88_v23 = vpop.xlane.xlu0 %87 }
  0xd1   :  { %v90_v24 = vmul.f32 0.03125, %v88_v23 }
  0xd3   :  { %v91_v25 = vsub.f32 %v85_v21, %v90_v24 }
  0xd5   :  { %v92_v26 = vmul.f32 %v91_v25, %v91_v25 }
  0xd7   :  { %v93_v27 = vsel %vm53_vm0, %v92_v26, 0.0 }
  0xd8   :  { %94 = vadd.xlane.f32.xlu0 %v93_v27 }
 0x165   :  { %v95_v35 = vpop.xlane.xlu0 %94 }
 0x166   :  { %v96_v36 = vmul.f32 0.03125, %v95_v35 }
 0x168   :  { %v97_v37 = vadd.f32 1e-09, %v96_v36 }
 0x16a   :  { %251 = vrsqrt.f32 %v97_v37 }
 0x174   :  { %v252_v38 = vpop.eup %251 }
 0x175   :  { %v99_v40 = vmul.f32 %v252_v38, %v91_v25 }
 0x177   :  { %v107_v42 = vmul.f32 %v217_v39, %v99_v40 }
 0x179   :  { %v115_v43 = vadd.f32 %v218_v41, %v107_v42 }
 0x17b   :  { %235 = vmatmul.mubr.msk.f32.vlgmr.msra.gmra.mrb[0].mxu0 %vm58_vm1, %v115_v43 }
 0x24e   :  { %v196_v45 = vpop.f32.mrb[0].mxu0 }
 0x24f   :  { %v197_v46 = vadd.f32 %v219_v44, %v196_v45  ;;  %v236_v47 = vpop.f32.mrb[1].mxu0 }
 0x251   :  { %200 = vst [vmem:[#allocation8] sm:$0x3] %v197_v46 }
 0x252   :  { %308 = shalt.err (!%p305_p6)
}
 0x253   :  { %s309_s26 = scalar_lea.hbm %s420_s5, 32 }
 0x254   :  { %p310_p7 = scmp.ne.s32.totalorder %s420_s5, %s309_s26  ;;  %p313_p8 = scmp.lt.u32.totalorder %s309_s26, %s420_s5 }
 0x256   :  { %p315_p9 = pnand %p313_p8, %p310_p7 }
 0x258   :  { %318 = shalt.err (!%p315_p9)
}
 0x259   :  { %210 = dma.vmem_to_hbm [thread:$0]  %s208_s24, 32, %s420_s5, [#allocation5]  }
 0x25a   :  { %323 = dma.done.wait [#allocation5], 32  }
 0x25b   :  { %324 = vsyncadd [#allocation5], 4294967264 }
 0x25c   :  { %214 = vsyncpa [#allocation4], 1 }
 0x25d   :  { %215 = vsyncpa [#allocation7], 1 }
 0x25e   :  { %216 = vsyncpa [#allocation5], 1 }

</bundles_post_ra>
